<compile_context>
chip_gen: v7x
topology: tpu7x:2x2x1
jax: 0.10.0
libtpu: 0.0.40
codegen_flags: <defaults>
</compile_context>

<pallas_src>
import math
from functools import partial

import jax
import jax.numpy as jnp
from jax import lax
from jax.experimental import pallas as pl
from jax.experimental.pallas import tpu as pltpu

# ---------------- config (synthetic, small) ----------------
B = 2          # batch
T = 8          # sequence length
C = 32         # dim_embedding
N_HEAD = 4     # number of heads
HD = C // N_HEAD
USE_BIAS = True


def _softmax_last(x):
    m = jnp.max(x, axis=-1, keepdims=True)
    p = jnp.exp(x - m)
    # approx=True -> EUP vrcp slot (otherwise idle); divide becomes ~free.
    return p * pl.reciprocal(jnp.sum(p, axis=-1, keepdims=True), approx=True)


def _mha_kernel(x_ref, wqkv_ref, bqkv_ref, wp_ref, bp_ref, o_ref,
                *, n_head, head_dim, dim):
    # One batch element (one sequence) per grid step: x_ref is (T, C) bf16.
    x = x_ref[...]

    # Single fused QKV projection: (T, C) @ (C, 3C) -> (T, 3C), f32 accumulate.
    # The attention scale is already folded into the q-columns of wqkv/bqkv.
    qkv = jnp.dot(x, wqkv_ref[...], preferred_element_type=jnp.float32)
    qkv = qkv + bqkv_ref[...]                                    # f32

    # Per-head attention (tiny static trip count). K-transpose is expressed via
    # dot_general contracting dims, so no explicit transpose is emitted.
    heads = []
    for h in range(n_head):
        c0 = h * head_dim
        q_h = qkv[:, c0:c0 + head_dim]                           # (T, HD) pre-scaled
        k_h = qkv[:, dim + c0:dim + c0 + head_dim]               # (T, HD)
        v_h = qkv[:, 2 * dim + c0:2 * dim + c0 + head_dim]       # (T, HD)

        att = lax.dot_general(q_h, k_h,
                              dimension_numbers=(((1,), (1,)), ((), ())),
                              preferred_element_type=jnp.float32)  # q @ k^T
        att = _softmax_last(att)                                 # f32 softmax
        heads.append(jnp.dot(att, v_h, preferred_element_type=jnp.float32))

    # Register-resident head concat -> straight into the output projection
    # (no scratch slab, no masked partial stores, no reload).
    y = jnp.concatenate(heads, axis=-1)                          # (T, C) f32
    out = jnp.dot(y.astype(wp_ref.dtype), wp_ref[...],
                  preferred_element_type=jnp.float32) + bp_ref[...]
    o_ref[...] = out.astype(o_ref.dtype)


def prepare_params(params, n_head):
    """One-time weight preprocessing (hoisted out of the forward path).

    params use the PyTorch Linear layout (out, in); c_attn rows ordered q|k|v.
    Returns fused / transposed / scale-folded weights, matmul weights in bf16.
    """
    wa = params["w_attn"]                         # (3C, C)
    ba = params["b_attn"]                         # (3C,)
    wp = params["w_proj"]                         # (C, C)
    bp = params["b_proj"]                         # (C,)
    c = wp.shape[0]
    hd = c // n_head
    scale = 1.0 / math.sqrt(hd)

    w_qkv = wa.T                                  # (C, 3C), cols ordered q|k|v
    b_qkv = ba.reshape(1, 3 * c)

    # Fold the 1/sqrt(head_dim) attention scale into the q projection.
    col_scale = jnp.concatenate(
        [jnp.full((c,), scale, jnp.float32), jnp.ones((2 * c,), jnp.float32)])
    w_qkv = w_qkv * col_scale[None, :]
    b_qkv = b_qkv * col_scale[None, :]

    return {
        "w_qkv": w_qkv.astype(jnp.bfloat16),      # MXU-native
        "b_qkv": b_qkv.astype(jnp.float32),       # added post f32 accumulation
        "w_proj": wp.T.astype(jnp.bfloat16),
        "b_proj": bp.reshape(1, c).astype(jnp.float32),
    }


def multi_head_attention(x, prepared, *, n_head):
    """x: (B, T, C) -> (B, T, C). `prepared` comes from prepare_params()."""
    Bs, Ts, Cs = x.shape
    assert Cs % n_head == 0
    hd = Cs // n_head

    xr = x.reshape(Bs * Ts, Cs).astype(jnp.bfloat16)  # fold batch into rows

    kernel = partial(_mha_kernel, n_head=n_head, head_dim=hd, dim=Cs)

    out = pl.pallas_call(
        kernel,
        out_shape=jax.ShapeDtypeStruct((Bs * Ts, Cs), x.dtype),
        grid=(Bs,),                                   # one sequence per step
        in_specs=[
            pl.BlockSpec((Ts, Cs), lambda b: (b, 0)),          # x rows of batch b
            pl.BlockSpec((Cs, 3 * Cs), lambda b: (0, 0)),      # fused W_qkv
            pl.BlockSpec((1, 3 * Cs), lambda b: (0, 0)),       # fused b_qkv
            pl.BlockSpec((Cs, Cs), lambda b: (0, 0)),          # W_proj
            pl.BlockSpec((1, Cs), lambda b: (0, 0)),           # b_proj
        ],
        out_specs=pl.BlockSpec((Ts, Cs), lambda b: (b, 0)),
        compiler_params=pltpu.CompilerParams(
            dimension_semantics=("parallel",)),       # megacore-shard over batch
    )(xr, prepared["w_qkv"], prepared["b_qkv"],
      prepared["w_proj"], prepared["b_proj"])

    return out.reshape(Bs, Ts, Cs)


# ---------------- pure-JAX reference (for correctness) ----------------
def reference(x, params, *, n_head):
    Bs, Ts, Cs = x.shape
    hd = Cs // n_head
    qkv = x @ params["w_attn"].T + params["b_attn"]
    q, k, v = qkv[..., :Cs], qkv[..., Cs:2 * Cs], qkv[..., 2 * Cs:]

    def split_heads(t):
        return t.reshape(Bs, Ts, n_head, hd).transpose(0, 2, 1, 3)

    qh, kh, vh = split_heads(q), split_heads(k), split_heads(v)
    att = jnp.einsum("bhtd,bhsd->bhts", qh, kh) / math.sqrt(hd)
    att = jax.nn.softmax(att, axis=-1)
    y = jnp.einsum("bhts,bhsd->bhtd", att, vh)
    y = y.transpose(0, 2, 1, 3).reshape(Bs, Ts, Cs)
    return y @ params["w_proj"].T + params["b_proj"]


if __name__ == "__main__":
    key = jax.random.PRNGKey(0)
    keys = jax.random.split(key, 5)

    # Deterministic parameter init (PyTorch shapes: Linear.weight is (out, in)).
    s = 0.02
    params = {
        "w_attn": s * jax.random.normal(keys[0], (3 * C, C), jnp.float32),   # c_attn
        "b_attn": (s * jax.random.normal(keys[1], (3 * C,), jnp.float32)
                   if USE_BIAS else jnp.zeros((3 * C,), jnp.float32)),
        "w_proj": s * jax.random.normal(keys[2], (C, C), jnp.float32),       # c_proj
        "b_proj": (s * jax.random.normal(keys[3], (C,), jnp.float32)
                   if USE_BIAS else jnp.zeros((C,), jnp.float32)),
    }

    x = jax.random.normal(keys[4], (B, T, C), jnp.float32)

    # One-time weight preprocessing (hoisted out of the per-call forward path).
    prepared = prepare_params(params, N_HEAD)

    out = multi_head_attention(x, prepared, n_head=N_HEAD)
    out = jax.block_until_ready(out)

    ref = reference(x, params, n_head=N_HEAD)
    assert out.shape == (B, T, C)
    # Tolerance accounts for bf16 MXU inputs (f32 accumulation) and
    # pl.reciprocal(approx=True) in the softmax.
    assert jnp.allclose(out, ref, atol=2e-3, rtol=1e-2), "mismatch vs reference"

    print("KERNEL_OK")
</pallas_src>

<mosaic_0001>
module attributes {stable_mosaic.version = 11 : i64} {
  func.func @_mha_kernel(%arg0: i32, %arg1: memref<8x32xbf16, #tpu.memory_space<vmem>>, %arg2: memref<32x96xbf16, #tpu.memory_space<vmem>>, %arg3: memref<1x96xf32, #tpu.memory_space<vmem>>, %arg4: memref<32x32xbf16, #tpu.memory_space<vmem>>, %arg5: memref<1x32xf32, #tpu.memory_space<vmem>>, %arg6: memref<8x32xf32, #tpu.memory_space<vmem>>) attributes {dimension_semantics = [#tpu.dimension_semantics<parallel>], iteration_bounds = array<i64: 2>, scalar_prefetch = 0 : i64, scratch_operands = 0 : i64, tpu.core_type = #tpu.core_type<tc>, window_params = [{transform_indices = @transform_0, window_bounds = array<i64: 8, 32>}, {pipeline_mode = #tpu.pipeline_mode<synchronous>, transform_indices = @transform_1, window_bounds = array<i64: 32, 96>}, {pipeline_mode = #tpu.pipeline_mode<synchronous>, transform_indices = @transform_2, window_bounds = array<i64: 1, 96>}, {pipeline_mode = #tpu.pipeline_mode<synchronous>, transform_indices = @transform_3, window_bounds = array<i64: 32, 32>}, {pipeline_mode = #tpu.pipeline_mode<synchronous>, transform_indices = @transform_4, window_bounds = array<i64: 1, 32>}, {transform_indices = @transform_5, window_bounds = array<i64: 8, 32>}]} {
    %c0 = arith.constant 0 : index
    %c0_0 = arith.constant 0 : index
    %0 = vector.load %arg1[%c0, %c0_0] : memref<8x32xbf16, #tpu.memory_space<vmem>>, vector<8x32xbf16>
    %c0_1 = arith.constant 0 : index
    %c0_2 = arith.constant 0 : index
    %1 = vector.load %arg2[%c0_1, %c0_2] : memref<32x96xbf16, #tpu.memory_space<vmem>>, vector<32x96xbf16>
    %cst = arith.constant dense<0.000000e+00> : vector<8x96xf32>
    %2 = tpu.matmul %0, %1, %cst {dimension_numbers = #tpu.dot_dimension_numbers<[1], [0], [0], [1], [0, 0, 1, 1], [], []>} : vector<8x32xbf16>, vector<32x96xbf16>, vector<8x96xf32> -> vector<8x96xf32>
    %c0_3 = arith.constant 0 : index
    %c0_4 = arith.constant 0 : index
    %3 = vector.load %arg3[%c0_3, %c0_4] : memref<1x96xf32, #tpu.memory_space<vmem>>, vector<1x96xf32>
    %4 = vector.broadcast %3 : vector<1x96xf32> to vector<8x96xf32>
    %5 = arith.addf %2, %4 : vector<8x96xf32>
    %6 = vector.extract_strided_slice %5 {offsets = [0, 0], sizes = [8, 8], strides = [1, 1]} : vector<8x96xf32> to vector<8x8xf32>
    %7 = vector.extract_strided_slice %5 {offsets = [0, 32], sizes = [8, 8], strides = [1, 1]} : vector<8x96xf32> to vector<8x8xf32>
    %8 = vector.extract_strided_slice %5 {offsets = [0, 64], sizes = [8, 8], strides = [1, 1]} : vector<8x96xf32> to vector<8x8xf32>
    %cst_5 = arith.constant dense<0.000000e+00> : vector<8x8xf32>
    %9 = tpu.matmul %6, %7, %cst_5 {dimension_numbers = #tpu.dot_dimension_numbers<[1], [1], [0], [0], [0, 0, 1, 0], [], []>} : vector<8x8xf32>, vector<8x8xf32>, vector<8x8xf32> -> vector<8x8xf32>
    %cst_6 = arith.constant dense<0xFF800000> : vector<8xf32>
    %10 = vector.multi_reduction <maximumf>, %9, %cst_6 [1] : vector<8x8xf32> to vector<8xf32>
    %11 = vector.shape_cast %10 : vector<8xf32> to vector<8x1xf32>
    %12 = vector.broadcast %11 : vector<8x1xf32> to vector<8x8xf32>
    %13 = arith.subf %9, %12 : vector<8x8xf32>
    %14 = math.exp %13 : vector<8x8xf32>
    %cst_7 = arith.constant dense<0.000000e+00> : vector<8xf32>
    %15 = vector.multi_reduction <add>, %14, %cst_7 [1] : vector<8x8xf32> to vector<8xf32>
    %16 = vector.shape_cast %15 : vector<8xf32> to vector<8x1xf32>
    %17 = tpu.reciprocal %16 {approx = true} : vector<8x1xf32> -> vector<8x1xf32>
    %18 = vector.broadcast %17 : vector<8x1xf32> to vector<8x8xf32>
    %19 = arith.mulf %14, %18 : vector<8x8xf32>
    %cst_8 = arith.constant dense<0.000000e+00> : vector<8x8xf32>
    %20 = tpu.matmul %19, %8, %cst_8 {dimension_numbers = #tpu.dot_dimension_numbers<[1], [0], [0], [1], [0, 0, 1, 1], [], []>} : vector<8x8xf32>, vector<8x8xf32>, vector<8x8xf32> -> vector<8x8xf32>
    %21 = vector.extract_strided_slice %5 {offsets = [0, 8], sizes = [8, 8], strides = [1, 1]} : vector<8x96xf32> to vector<8x8xf32>
    %22 = vector.extract_strided_slice %5 {offsets = [0, 40], sizes = [8, 8], strides = [1, 1]} : vector<8x96xf32> to vector<8x8xf32>
    %23 = vector.extract_strided_slice %5 {offsets = [0, 72], sizes = [8, 8], strides = [1, 1]} : vector<8x96xf32> to vector<8x8xf32>
    %cst_9 = arith.constant dense<0.000000e+00> : vector<8x8xf32>
    %24 = tpu.matmul %21, %22, %cst_9 {dimension_numbers = #tpu.dot_dimension_numbers<[1], [1], [0], [0], [0, 0, 1, 0], [], []>} : vector<8x8xf32>, vector<8x8xf32>, vector<8x8xf32> -> vector<8x8xf32>
    %cst_10 = arith.constant dense<0xFF800000> : vector<8xf32>
    %25 = vector.multi_reduction <maximumf>, %24, %cst_10 [1] : vector<8x8xf32> to vector<8xf32>
    %26 = vector.shape_cast %25 : vector<8xf32> to vector<8x1xf32>
    %27 = vector.broadcast %26 : vector<8x1xf32> to vector<8x8xf32>
    %28 = arith.subf %24, %27 : vector<8x8xf32>
    %29 = math.exp %28 : vector<8x8xf32>
    %cst_11 = arith.constant dense<0.000000e+00> : vector<8xf32>
    %30 = vector.multi_reduction <add>, %29, %cst_11 [1] : vector<8x8xf32> to vector<8xf32>
    %31 = vector.shape_cast %30 : vector<8xf32> to vector<8x1xf32>
    %32 = tpu.reciprocal %31 {approx = true} : vector<8x1xf32> -> vector<8x1xf32>
    %33 = vector.broadcast %32 : vector<8x1xf32> to vector<8x8xf32>
    %34 = arith.mulf %29, %33 : vector<8x8xf32>
    %cst_12 = arith.constant dense<0.000000e+00> : vector<8x8xf32>
    %35 = tpu.matmul %34, %23, %cst_12 {dimension_numbers = #tpu.dot_dimension_numbers<[1], [0], [0], [1], [0, 0, 1, 1], [], []>} : vector<8x8xf32>, vector<8x8xf32>, vector<8x8xf32> -> vector<8x8xf32>
    %36 = vector.extract_strided_slice %5 {offsets = [0, 16], sizes = [8, 8], strides = [1, 1]} : vector<8x96xf32> to vector<8x8xf32>
    %37 = vector.extract_strided_slice %5 {offsets = [0, 48], sizes = [8, 8], strides = [1, 1]} : vector<8x96xf32> to vector<8x8xf32>
    %38 = vector.extract_strided_slice %5 {offsets = [0, 80], sizes = [8, 8], strides = [1, 1]} : vector<8x96xf32> to vector<8x8xf32>
    %cst_13 = arith.constant dense<0.000000e+00> : vector<8x8xf32>
    %39 = tpu.matmul %36, %37, %cst_13 {dimension_numbers = #tpu.dot_dimension_numbers<[1], [1], [0], [0], [0, 0, 1, 0], [], []>} : vector<8x8xf32>, vector<8x8xf32>, vector<8x8xf32> -> vector<8x8xf32>
    %cst_14 = arith.constant dense<0xFF800000> : vector<8xf32>
    %40 = vector.multi_reduction <maximumf>, %39, %cst_14 [1] : vector<8x8xf32> to vector<8xf32>
    %41 = vector.shape_cast %40 : vector<8xf32> to vector<8x1xf32>
    %42 = vector.broadcast %41 : vector<8x1xf32> to vector<8x8xf32>
    %43 = arith.subf %39, %42 : vector<8x8xf32>
    %44 = math.exp %43 : vector<8x8xf32>
    %cst_15 = arith.constant dense<0.000000e+00> : vector<8xf32>
    %45 = vector.multi_reduction <add>, %44, %cst_15 [1] : vector<8x8xf32> to vector<8xf32>
    %46 = vector.shape_cast %45 : vector<8xf32> to vector<8x1xf32>
    %47 = tpu.reciprocal %46 {approx = true} : vector<8x1xf32> -> vector<8x1xf32>
    %48 = vector.broadcast %47 : vector<8x1xf32> to vector<8x8xf32>
    %49 = arith.mulf %44, %48 : vector<8x8xf32>
    %cst_16 = arith.constant dense<0.000000e+00> : vector<8x8xf32>
    %50 = tpu.matmul %49, %38, %cst_16 {dimension_numbers = #tpu.dot_dimension_numbers<[1], [0], [0], [1], [0, 0, 1, 1], [], []>} : vector<8x8xf32>, vector<8x8xf32>, vector<8x8xf32> -> vector<8x8xf32>
    %51 = vector.extract_strided_slice %5 {offsets = [0, 24], sizes = [8, 8], strides = [1, 1]} : vector<8x96xf32> to vector<8x8xf32>
    %52 = vector.extract_strided_slice %5 {offsets = [0, 56], sizes = [8, 8], strides = [1, 1]} : vector<8x96xf32> to vector<8x8xf32>
    %53 = vector.extract_strided_slice %5 {offsets = [0, 88], sizes = [8, 8], strides = [1, 1]} : vector<8x96xf32> to vector<8x8xf32>
    %cst_17 = arith.constant dense<0.000000e+00> : vector<8x8xf32>
    %54 = tpu.matmul %51, %52, %cst_17 {dimension_numbers = #tpu.dot_dimension_numbers<[1], [1], [0], [0], [0, 0, 1, 0], [], []>} : vector<8x8xf32>, vector<8x8xf32>, vector<8x8xf32> -> vector<8x8xf32>
    %cst_18 = arith.constant dense<0xFF800000> : vector<8xf32>
    %55 = vector.multi_reduction <maximumf>, %54, %cst_18 [1] : vector<8x8xf32> to vector<8xf32>
    %56 = vector.shape_cast %55 : vector<8xf32> to vector<8x1xf32>
    %57 = vector.broadcast %56 : vector<8x1xf32> to vector<8x8xf32>
    %58 = arith.subf %54, %57 : vector<8x8xf32>
    %59 = math.exp %58 : vector<8x8xf32>
    %cst_19 = arith.constant dense<0.000000e+00> : vector<8xf32>
    %60 = vector.multi_reduction <add>, %59, %cst_19 [1] : vector<8x8xf32> to vector<8xf32>
    %61 = vector.shape_cast %60 : vector<8xf32> to vector<8x1xf32>
    %62 = tpu.reciprocal %61 {approx = true} : vector<8x1xf32> -> vector<8x1xf32>
    %63 = vector.broadcast %62 : vector<8x1xf32> to vector<8x8xf32>
    %64 = arith.mulf %59, %63 : vector<8x8xf32>
    %cst_20 = arith.constant dense<0.000000e+00> : vector<8x8xf32>
    %65 = tpu.matmul %64, %53, %cst_20 {dimension_numbers = #tpu.dot_dimension_numbers<[1], [0], [0], [1], [0, 0, 1, 1], [], []>} : vector<8x8xf32>, vector<8x8xf32>, vector<8x8xf32> -> vector<8x8xf32>
    %66 = tpu.concatenate %20, %35, %50, %65 in 1 : vector<8x8xf32>, vector<8x8xf32>, vector<8x8xf32>, vector<8x8xf32> -> vector<8x32xf32>
    %67 = arith.truncf %66 : vector<8x32xf32> to vector<8x32xbf16>
    %c0_21 = arith.constant 0 : index
    %c0_22 = arith.constant 0 : index
    %68 = vector.load %arg4[%c0_21, %c0_22] : memref<32x32xbf16, #tpu.memory_space<vmem>>, vector<32x32xbf16>
    %cst_23 = arith.constant dense<0.000000e+00> : vector<8x32xf32>
    %69 = tpu.matmul %67, %68, %cst_23 {dimension_numbers = #tpu.dot_dimension_numbers<[1], [0], [0], [1], [0, 0, 1, 1], [], []>} : vector<8x32xbf16>, vector<32x32xbf16>, vector<8x32xf32> -> vector<8x32xf32>
    %c0_24 = arith.constant 0 : index
    %c0_25 = arith.constant 0 : index
    %70 = vector.load %arg5[%c0_24, %c0_25] : memref<1x32xf32, #tpu.memory_space<vmem>>, vector<1x32xf32>
    %71 = vector.broadcast %70 : vector<1x32xf32> to vector<8x32xf32>
    %72 = arith.addf %69, %71 : vector<8x32xf32>
    %c0_26 = arith.constant 0 : index
    %c0_27 = arith.constant 0 : index
    %73 = vector.load %arg6[%c0_26, %c0_27] : memref<8x32xf32, #tpu.memory_space<vmem>>, vector<8x32xf32>
    tpu.vector_store %arg6[%c0_26, %c0_27], %72 {strides = array<i32>} : memref<8x32xf32, #tpu.memory_space<vmem>>, vector<8x32xf32>,
    return
  }
  func.func @transform_0(%arg0: i32) -> (i32, i32) {
    %c0_i32 = arith.constant 0 : i32
    %c0_i32_0 = arith.constant 0 : i32
    return %arg0, %c0_i32 : i32, i32
  }
  func.func @transform_1(%arg0: i32) -> (i32, i32) {
    %c0_i32 = arith.constant 0 : i32
    %c0_i32_0 = arith.constant 0 : i32
    %c0_i32_1 = arith.constant 0 : i32
    return %c0_i32, %c0_i32_0 : i32, i32
  }
  func.func @transform_2(%arg0: i32) -> (i32, i32) {
    %c0_i32 = arith.constant 0 : i32
    %c0_i32_0 = arith.constant 0 : i32
    %c0_i32_1 = arith.constant 0 : i32
    return %c0_i32, %c0_i32_0 : i32, i32
  }
  func.func @transform_3(%arg0: i32) -> (i32, i32) {
    %c0_i32 = arith.constant 0 : i32
    %c0_i32_0 = arith.constant 0 : i32
    %c0_i32_1 = arith.constant 0 : i32
    return %c0_i32, %c0_i32_0 : i32, i32
  }
  func.func @transform_4(%arg0: i32) -> (i32, i32) {
    %c0_i32 = arith.constant 0 : i32
    %c0_i32_0 = arith.constant 0 : i32
    %c0_i32_1 = arith.constant 0 : i32
    return %c0_i32, %c0_i32_0 : i32, i32
  }
  func.func @transform_5(%arg0: i32) -> (i32, i32) {
    %c0_i32 = arith.constant 0 : i32
    %c0_i32_0 = arith.constant 0 : i32
    return %arg0, %c0_i32 : i32, i32
  }
}

</mosaic_0001>

<bundles_post_ra>
// kernel: tpu_custom_call.1
= control target key start
LH: loop header
LB: loop body
LE: loop exit
PB: predicated region body
PF: predicated region fallthrough
CT: control target
= control target key end

     0   :  { %10 = vsyncpa [#allocation3], 0  ;;  %s1924_s0 = inlined_call_operand.hbm [shape: bf16[16,32], index: 0, kind: input, shape index: {}]   ;;  %s1925_s1 = inlined_call_operand.hbm [shape: bf16[32,96], index: 1, kind: input, shape index: {}]   ;;  %s1926_s2 = inlined_call_operand.vmem [shape: f32[1,96], index: 2, kind: input, shape index: {}]   ;;  %s1927_s3 = inlined_call_operand.hbm [shape: bf16[32,32], index: 3, kind: input, shape index: {}]   ;;  %s1928_s4 = inlined_call_operand.vmem [shape: f32[1,32], index: 4, kind: input, shape index: {}]   ;;  %s1929_s5 = inlined_call_operand.hbm [shape: f32[16,32], index: 5, kind: output, shape index: {}]  }
   0x1   :  { %12 = vsyncpa [#allocation3 + $0x1], 0 }
   0x2   :  { %13 = vsyncpa [#allocation6], 0 }
   0x3   :  { %14 = vsyncpa [#allocation4], 0 }
   0x4   :  { %16 = vsyncpa [#allocation4 + $0x1], 0  ;;  %s1615_s18 = smov 0   ;;  %s1617_s19 = smov 0  }
   0x5   :  { %s1619_s20 = smov 0   ;;  %s1621_s21 = smov 0  }
   0x6 LB: > { %s1636_s22 = sadd.s32 4294967295, %s1561_s21   ;;  %s1186_s23 = sadd.s32 4294967294, %s1561_s21   ;;  %s1561_s21 = sphi %s1621_s21, %s1949_s21   ;;  %s1557_s20 = sphi %s1619_s20, %s1948_s20   ;;  %s1553_s19 = sphi %s1617_s19, %s1947_s19   ;;  %s1549_s18 = sphi %s1615_s18, %s1946_s18  }
   0x7   : > { %p42_p0 = scmp.ne.s32.totalorder %s1553_s19, %s1549_s18  ;;  %p1930_p1 = scmp.eq.s32.totalorder %s1636_s22, 0 }
   0x8   : > { %p156_p3 = scmp.eq.s32.totalorder %s1186_s23, 1  ;;  %p1187_p5 = scmp.ge.s32.totalorder %s1561_s21, 1 }
   0x9   : > { %p1645_p4 = por %p1930_p1, %p42_p0  ;;  %p163_p7 = scmp.lt.s32.totalorder %s1561_s21, 3 }
   0xa   : > { %p1650_p6 = por %p156_p3, %p42_p0  ;;  %s1563_s27 = smov [#allocation5]  }
   0xb   : > { %s1933_s24 = scalar_select %p1645_p4, 1, 0 }
   0xc   : > { %s1934_s25 = scalar_select %p1650_p6, 1, 0 }
   0xd   : > { %p1655_p8 = pnand %p1187_p5, %p163_p7  ;;  %s175_s28 = sshll.u32 %s1563_s27, 4  ;;  %s1659_s28 = int_to_ptr.vmem [resolvable:$true] %s175_s28 }
   0xe   : > { %s1564_s30 = smov [#allocation7]   ;;  %s1405_s9 = scalar_lea.hbm %s1925_s1, 256 }
   0xf   : > { %p1312_p9 = pneg %p1655_p8  ;;  %s191_s6 = sshll.u32 %s1564_s30, 4  ;;  %s1670_s6 = int_to_ptr.vmem [resolvable:$true] %s191_s6 }
  0x10   : > { %p1406_p12 = scmp.ne.s32.totalorder %s1925_s1, %s1405_s9  ;;  %p1412_p5 = scmp.lt.u32.totalorder %s1405_s9, %s1925_s1 }
  0x11   : > { %p1666_p11 = pnand %p1312_p9, %p1930_p1 }
  0x13   : > { %p1407_p13 = pneg %p1666_p11 }
  0x15   : > { %p1408_p0 = pnand %p1407_p13, %p1406_p12 }
  0x17   : > { %p1409_p3 = pneg %p1408_p0 }
  0x19   : > { %p1414_p7 = pnand %p1412_p5, %p1409_p3 }
  0x1b   : > { %1417 = shalt.err (!%p1414_p7)
}
  0x1c   : > { %s1418_s14 = scalar_lea.vmem %s1659_s28, 256  ;;  %p1426_p2 = scmp.lt.s32.totalorder %s1659_s28, %s1659_s28 }
  0x1d   : > { %p1419_p9 = scmp.ne.s32.totalorder %s1659_s28, %s1418_s14  ;;  %p1427_p12 = scmp.lt.s32.totalorder %s1418_s14, %s1418_s14 }
  0x1f   : > { %p1421_p10 = pnand %p1419_p9, %p1407_p13  ;;  %p1428_p0 = por %p1427_p12, %p1426_p2 }
  0x21   : > { %p1422_p1 = pneg %p1421_p10 }
  0x23   : > { %p1429_p6 = pnand %p1428_p0, %p1422_p1 }
  0x25   : > { %1432 = shalt.err (!%p1429_p6)
}
  0x26   : > { %s1565_s15 = smov 64   ;;  %s1566_s16 = smov 4  }
  0x27   : > { %1315 = dma.hbm_to_vmem [thread:$0]  (!%p1666_p11), %s1925_s1, 256, %s1659_s28, [#allocation6], %s1565_s15, %s1565_s15, %s1566_s16  }
  0x28   : > { %s1433_s7 = scalar_lea.hbm %s1927_s3, 256 }
  0x29   : > { %p1434_p2 = scmp.ne.s32.totalorder %s1927_s3, %s1433_s7  ;;  %p1440_p10 = scmp.lt.u32.totalorder %s1433_s7, %s1927_s3 }
  0x2b   : > { %p1436_p1 = pnand %p1434_p2, %p1407_p13 }
  0x2d   : > { %p1437_p6 = pneg %p1436_p1 }
  0x2f   : > { %p1442_p3 = pnand %p1440_p10, %p1437_p6 }
  0x31   : > { %1445 = shalt.err (!%p1442_p3)
}
  0x32   : > { %s1446_s28 = scalar_lea.vmem %s1670_s6, 256  ;;  %p1454_p12 = scmp.lt.s32.totalorder %s1670_s6, %s1670_s6 }
  0x33   : > { %p1447_p5 = scmp.ne.s32.totalorder %s1670_s6, %s1446_s28  ;;  %p1455_p0 = scmp.lt.s32.totalorder %s1446_s28, %s1446_s28 }
  0x35   : > { %p1449_p7 = pnand %p1447_p5, %p1407_p13  ;;  %p1456_p2 = por %p1455_p0, %p1454_p12 }
  0x37   : > { %p1450_p9 = pneg %p1449_p7 }
  0x39   : > { %p1457_p1 = pnand %p1456_p2, %p1450_p9 }
  0x3b   : > { %1460 = shalt.err (!%p1457_p1)
}
  0x3c   : > { %1318 = dma.hbm_to_vmem [thread:$0]  (!%p1666_p11), %s1927_s3, 256, %s1670_s6, [#allocation6], %s1565_s15, %s1565_s15, %s1566_s16  }
  0x3d   : > { %s1725_s14 = sadd.s32 1, %s1561_s21   ;;  %s29_s29 = sadd.s32 1, %s1557_s20 }
  0x3e   : > { %s26_s17 = ssub.s32 %s1561_s21, %s1725_s14  ;;  %p36_p13 = scmp.ne.s32.totalorder %s1557_s20, %s1553_s19 }
  0x3f   : > { %p27_p6 = scmp.eq.s32.totalorder %s26_s17, 0  ;;  %p37_p10 = scmp.eq.s32.totalorder %s1561_s21, 0 }
  0x40   : > { %p1937_p3 = scmp.eq.s32.totalorder %s1636_s22, 1  ;;  %p1329_p7 = scmp.lt.s32.totalorder %s1561_s21, 2 }
  0x41   : > { %s1741_s27 = scalar_select %p27_p6, %s1557_s20, %s29_s29  }
  0x42   : > { %p1735_p5 = por %p1937_p3, %p36_p13  ;;  %p38_p9 = por %p37_p10, %p36_p13 }
  0x43   : > { %s208_s30 = sand.u32 1, %s1557_s20   ;;  %s1192_s6 = sshll.u32 %s1561_s21, 6 }
  0x44   : > { %s1938_s23 = scalar_select %p1735_p5, 1, 0 }
  0x45   : > { %s1191_s7 = sshll.u32 %s208_s30, 2  ;;  %s1748_s8 = scalar_lea.hbm %s1924_s0, %s1192_s6 }
  0x46   : > { %s212_s9 = scalar_lea.vmem [#allocation2], %s1191_s7  ;;  %p1752_p11 = pnand %p1329_p7, %p38_p9 }
  0x47   : > { %s219_s10 = sshll.u32 %s212_s9, 4  ;;  %s209_s28 = scalar_lea.sflag [#allocation3], %s208_s30  ;;  %s1750_s10 = int_to_ptr.vmem [resolvable:$true] %s219_s10 }
  0x48   : > { %s1461_s12 = scalar_lea.hbm %s1748_s8, 64  ;;  %p1463_p0 = pneg %p1752_p11 }
  0x49   : > { %p1462_p12 = scmp.ne.s32.totalorder %s1748_s8, %s1461_s12  ;;  %s1466_s17 = scalar_lea.hbm %s1924_s0, 128 }
  0x4a   : > { %p1467_p13 = scmp.lt.u32.totalorder %s1748_s8, %s1924_s0  ;;  %p1468_p6 = scmp.lt.u32.totalorder %s1466_s17, %s1461_s12 }
  0x4b   : > { %p1464_p2 = pnand %p1463_p0, %p1462_p12  ;;  %p1470_p3 = scmp.lt.u32.totalorder %s1461_s12, %s1748_s8 }
  0x4c   : > { %p1469_p10 = por %p1468_p6, %p1467_p13 }
  0x4d   : > { %p1465_p1 = pneg %p1464_p2 }
  0x4e   : > { %p1471_p7 = por %p1470_p3, %p1469_p10 }
  0x50   : > { %p1472_p9 = pnand %p1471_p7, %p1465_p1 }
  0x52   : > { %1475 = shalt.err (!%p1472_p9)
}
  0x53   : > { %s1476_s30 = scalar_lea.vmem %s1750_s10, 64  ;;  %s1567_s15 = smov [#allocation2]  }
  0x54   : > { %p1477_p12 = scmp.ne.s32.totalorder %s1750_s10, %s1476_s30  ;;  %s1481_s16 = sshll.u32 %s1567_s15, 4  ;;  %s1482_s16 = int_to_ptr.vmem [resolvable:$false] %s1481_s16 }
  0x55   : > { %s1483_s9 = scalar_lea.vmem %s1482_s16, 128  ;;  %p1484_p4 = scmp.lt.s32.totalorder %s1750_s10, %s1482_s16 }
  0x56   : > { %p1479_p2 = pnand %p1477_p12, %p1463_p0  ;;  %p1485_p13 = scmp.lt.s32.totalorder %s1483_s9, %s1476_s30 }
  0x58   : > { %p1480_p5 = pneg %p1479_p2  ;;  %p1486_p6 = por %p1485_p13, %p1484_p4 }
  0x5a   : > { %p1487_p10 = pnand %p1486_p6, %p1480_p5 }
  0x5c   : > { %1490 = shalt.err (!%p1487_p10)
}
  0x5d   : > { %1322 = dma.hbm_to_vmem [thread:$0]  (!%p1752_p11), %s1748_s8, 64, %s1750_s10, %s209_s28  }
  0x5e   : > { %228 = sbr.rel (%p1655_p8) target bundleno = 2069 (0x815), region = 40  ;;  %s1784_s12 = sand.u32 (!%p1655_p8), 1, %s1553_s19  }
  0x5f   : > { %s1194_s13 = sshll.u32 (!%p1655_p8), %s1784_s12, 2  ;;  %s231_s29 = scalar_lea.sflag (!%p1655_p8), [#allocation3], %s1784_s12 }
  0x60   : > { %s234_s17 = scalar_lea.vmem (!%p1655_p8), [#allocation2], %s1194_s13  ;;  %p1940_p4 = scmp.ne.s32.totalorder (!%p1655_p8), %s1933_s24, 0 }
  0x65   : > { %1536 = dma.done.wait (%p1940_p4), %s231_s29, 64  }
  0x66   : > { %1538 = vsyncadd (%p1940_p4), %s231_s29, 4294967232  ;;  %p1941_p5 = scmp.eq.s32.totalorder %s1636_s22, 0 }
  0x68   : > { %1540 = dma.done.wait (%p1941_p5), [#allocation6], 512   ;;  %p1942_p11 = pmov %p1941_p5 }
  0x69   : > { %v1568_v0 = vmov 0.0   ;;  %vm1569_vm0 = vmmov 0   ;;  %v1385_v1 = vld [vmem:[#allocation5] sm:$0xff]   ;;  %v1386_v2 = vld [vmem:[#allocation5 + $0x8] sm:$0xff]   ;;  %v270_v3 = vld [vmem:[%s234_s17] sm:$0xf] }
  0x6a   : > { %1542 = vsyncadd (%p1942_p11), [#allocation6], 4294966784  ;;  %1244 = vmatprep.subr.bf16.mxu0 %v1568_v0  ;;  %1248 = vmatprep.mubr.msk.bf16.mxu0 %vm1569_vm0, %v1568_v0  ;;  %vm294_vm1 = vcmask 261120   ;;  %v1198_v4 = vld [vmem:[%s1926_s2] ss:$0 sm:$0xff]  ;;  %s1570_s8 = smov 64  }
  0x6b   : > { %1257 = vmatprep.subr.mxu1 %v1568_v0  ;;  %1259 = vmatprep.mubr.msk.f32.mxu1 %vm1569_vm0, %v1568_v0  ;;  %s1571_s10 = smov 96   ;;  %s1572_s11 = smov 88   ;;  %vm341_vm2 = vcmask 64512   ;;  %vm1011_vm3 = vcmask 130048   ;;  %vm1013_vm4 = vcmask 195584  }
  0x6c   : > { %1245 = vmatpush3.bf16.msra.mxu0 %v1385_v1  ;;  %s1573_s28 = smov 120   ;;  %s1574_s7 = smov 80  }
  0x6d   : > { %1246 = vmatprep.subr.bf16.mxu0 %v1568_v0  ;;  %s1575_s6 = smov 72   ;;  %s1576_s30 = smov 112  }
  0x6e   : > { %s1577_s15 = smov 104   ;;  %s1578_s16 = smov 56  }
  0x6f   : > { %s1579_s9 = smov 40   ;;  %s1580_s13 = smov 48  }
  0x70   : > { %1247 = vmatpush3.bf16.msra.mxu0 %v1386_v2  ;;  %s1581_s29 = smov 8   ;;  %s1582_s17 = smov 16  }
  0x71   : > { %1252 = vmatprep.subr.mxu0 %v1568_v0  ;;  %s1583_s24 = smov 24   ;;  %s1197_s26 = sshll.u32 %s1784_s12, 3 }
  0x72   : > { %p1943_p0 = scmp.ne.s32.totalorder %s1938_s23, 0 }
  0x73   : > { %1249 = vmatmul.mubr.msk.bf16.vlgmr.msra.gmra.mrb[0].mxu0 %vm294_vm1, %v270_v3 }
  0x74   : > { %1254 = vmatprep.mubr.msk.f32.mxu0 %vm1569_vm0, %v1568_v0 }
 0x146   : > { %v332_v5 = vpop.f32.mrb[0].mxu0 }
 0x147   : > { %v1810_v6 = vadd.f32 %v1198_v4, %v332_v5  ;;  %v1250_v7 = vpop.f32.mrb[1].mxu0  ;;  %v1387_v4 = vld [vmem:[#allocation7] sm:$0xff]   ;;  %v1388_v5 = vld [vmem:[#allocation7 + $0x8] sm:$0xff]  }
 0x148   : > { %v335_v8 = vpop.f32.mrb[2].mxu0 }
 0x149   : > { %427 = vrot.lane.b32.xlu1 %v1810_v6, %s1570_s8  ;;  %339 = vrot.lane.b32.xlu0 %v1810_v6, %s1571_s10  ;;  %v1251_v9 = vpop.f32.mrb[3].mxu0 }
 0x14d   : > { %505 = vrot.lane.b32.xlu1 %v1810_v6, %s1572_s11  ;;  %s1219_s11 = sshll.u32 %s1636_s22, 7  ;;  %s1084_s22 = scalar_lea.sflag [#allocation4], %s1784_s12 }
 0x151   : > { %503 = vrot.lane.b32.xlu1 %v1810_v6, %s1573_s28  ;;  %s268_s28 = scalar_lea.vmem [#allocation8], %s1197_s26 }
 0x155   : > { %670 = vrot.lane.b32.xlu1 %v1810_v6, %s1574_s7  ;;  %s1097_s7 = sshll.u32 %s268_s28, 4  ;;  %s1881_s7 = int_to_ptr.vmem [resolvable:$true] %s1097_s7 }
 0x1bb   : > { %v428_v10 = vpop.permute.xlu1 %427  ;;  %v340_v11 = vpop.permute.xlu0 %339 }
 0x1bc   : > { %1253 = vmatpush3.xpose.msk.msra.mxu0 %vm341_vm2, %v340_v11  ;;  %1258 = vmatpush3.msra.mxu1 %v428_v10 }
 0x1bd   : > { %1262 = vmatprep.subr.mxu1 %v1568_v0  ;;  %1267 = vmatprep.subr.mxu0 %v1568_v0 }
 0x1bf   : > { %1255 = vmatmul.mubr.msk.f32.vlgmr.msra.gmra.mrb[4].mxu0 %vm341_vm2, %v1810_v6  ;;  %v506_v20 = vpop.permute.xlu1 %505 }
 0x1c0   : > { %1269 = vmatprep.mubr.msk.f32.mxu0 %vm1569_vm0, %v1568_v0 }
 0x1c3   : > { %v504_v21 = vpop.permute.xlu1 %503 }
 0x1c7   : > { %v671_v22 = vpop.permute.xlu1 %670 }
 0x292   : > { %v412_v12 = vpop.f32.mrb[4].mxu0 }
 0x293   : > { %v1256_v13 = vpop.f32.mrb[5].mxu0  ;;  %v416_v14 = vsel %vm341_vm2, %v412_v12, -inf }
 0x294   : > { %417 = vmax.xlane.f32.xlu0 %v416_v14 }
 0x2aa   : > { %835 = vrot.lane.b32.xlu0 %v1810_v6, %s1575_s6 }
 0x321   : > { %v418_v15 = vpop.xlane.xlu0 %417 }
 0x322   : > { %v419_v16 = vsub.f32 %v412_v12, %v418_v15 }
 0x324   : > { %v420_v17 = vmul.f32 1.442695, %v419_v16 }
 0x325   : > { %v836_v27 = vpop.permute.xlu0 %835 }
 0x326   : > { %1389 = vpow2.f32 %v420_v17 }
 0x330   : > { %v1390_v18 = vpop.eup %1389 }
 0x331   : > { %v422_v19 = vsel %vm341_vm2, %v1390_v18, 0.0 }
 0x332   : > { %423 = vadd.xlane.f32.xlu1 %v422_v19 }
 0x343   : > { %668 = vrot.lane.b32.xlu1 %v1810_v6, %s1576_s30 }
 0x347   : > { %833 = vrot.lane.b32.xlu1 %v1810_v6, %s1577_s15  ;;  %s1879_s15 = scalar_lea.hbm %s1929_s5, %s1219_s11 }
 0x3bf   : > { %v424_v23 = vpop.xlane.xlu1 %423 }
 0x3c0   : > { %1391 = vrcp.f32 %v424_v23 }
 0x3c3   : > { %v669_v26 = vpop.permute.xlu1 %668 }
 0x3c7   : > { %v834_v28 = vpop.permute.xlu1 %833 }
 0x3ca   : > { %v1392_v24 = vpop.eup %1391 }
 0x3cb   : > { %v426_v25 = vmul.f32 %v1392_v24, %v1390_v18  ;;  %v1214_v18 = vld [vmem:[%s1928_s4] ss:$0 sm:$0xff] }
 0x3cd   : > { %1260 = vmatmul.mubr.msk.f32.vlgmr.msra.gmra.mrb[0].mxu1 %vm341_vm2, %v426_v25 }
 0x3ce   : > { %1263 = vmatpush3.xpose.msk.msra.mxu1 %vm341_vm2, %v506_v20  ;;  %1264 = vmatprep.mubr.msk.f32.mxu1 %vm1569_vm0, %v1568_v0 }
 0x3cf   : > { %1272 = vmatprep.subr.mxu1 %v1568_v0 }
 0x3d1   : > { %1265 = vmatmul.mubr.msk.f32.vlgmr.msra.gmra.mrb[2].mxu1 %vm341_vm2, %v504_v21 }
 0x3d2   : > { %1273 = vmatpush3.xpose.msk.msra.mxu1 %vm341_vm2, %v671_v22  ;;  %1274 = vmatprep.mubr.msk.f32.mxu1 %vm1569_vm0, %v1568_v0 }
 0x3d3   : > { %1282 = vmatprep.subr.mxu1 %v1568_v0 }
 0x3d5   : > { %1275 = vmatmul.mubr.msk.f32.vlgmr.msra.gmra.mrb[4].mxu1 %vm341_vm2, %v669_v26 }
 0x3d6   : > { %1283 = vmatpush3.xpose.msk.msra.mxu1 %vm341_vm2, %v836_v27  ;;  %1284 = vmatprep.mubr.msk.f32.mxu1 %vm1569_vm0, %v1568_v0 }
 0x3d7   : > { %1292 = vmatprep.subr.bf16.mxu1 %v1568_v0 }
 0x3d9   : > { %1285 = vmatmul.mubr.msk.f32.vlgmr.msra.gmra.mrb[6].mxu1 %vm341_vm2, %v834_v28 }
 0x3da   : > { %1296 = vmatprep.mubr.msk.bf16.mxu1 %vm1569_vm0, %v1568_v0  ;;  %1293 = vmatpush3.bf16.msra.mxu1 %v1387_v4 }
 0x3db   : > { %1294 = vmatprep.subr.bf16.mxu1 %v1568_v0 }
 0x3de   : > { %1295 = vmatpush3.bf16.msra.mxu1 %v1388_v5 }
 0x4a0   : > { %v1847_v29 = vpop.f32.mrb[0].mxu1 }
 0x4a1   : > { %v1261_v30 = vpop.f32.mrb[1].mxu1 }
 0x4a4   : > { %v577_v31 = vpop.f32.mrb[2].mxu1 }
 0x4a5   : > { %v1266_v32 = vpop.f32.mrb[3].mxu1  ;;  %v581_v33 = vsel %vm341_vm2, %v577_v31, -inf }
 0x4a6   : > { %582 = vmax.xlane.f32.xlu1 %v581_v33 }
 0x4a8   : > { %v742_v34 = vpop.f32.mrb[4].mxu1 }
 0x4a9   : > { %v1276_v35 = vpop.f32.mrb[5].mxu1  ;;  %v746_v36 = vsel %vm341_vm2, %v742_v34, -inf }
 0x4aa   : > { %747 = vmax.xlane.f32.xlu0 %v746_v36 }
 0x4ac   : > { %v907_v37 = vpop.f32.mrb[6].mxu1 }
 0x4ad   : > { %v1286_v38 = vpop.f32.mrb[7].mxu1  ;;  %v911_v39 = vsel %vm341_vm2, %v907_v37, -inf }
 0x4ae   : > { %912 = vmax.xlane.f32.xlu1 %v911_v39 }
 0x4bf   : > { %592 = vrot.lane.b32.xlu1 %v1810_v6, %s1578_s16  ;;  %s1491_s16 = scalar_lea.vmem %s1881_s7, 128 }
 0x4c0   : > { %p1492_p8 = scmp.ne.s32.totalorder %s1881_s7, %s1491_s16 }
 0x4c2   : > { %p1493_p1 = pnand %p1492_p8, %p1943_p0 }
 0x4c4   : > { %p1494_p3 = pneg %p1493_p1 }
 0x533   : > { %v583_v40 = vpop.xlane.xlu1 %582 }
 0x534   : > { %v584_v41 = vsub.f32 %v577_v31, %v583_v40 }
 0x536   : > { %v585_v42 = vmul.f32 1.442695, %v584_v41 }
 0x537   : > { %v748_v43 = vpop.xlane.xlu0 %747 }
 0x538   : > { %1393 = vpow2.f32 %v585_v42  ;;  %v749_v44 = vsub.f32 %v742_v34, %v748_v43 }
 0x53a   : > { %v750_v45 = vmul.f32 1.442695, %v749_v44 }
 0x53b   : > { %v913_v46 = vpop.xlane.xlu1 %912 }
 0x53c   : > { %1395 = vpow2.f32 %v750_v45  ;;  %v914_v47 = vsub.f32 %v907_v37, %v913_v46 }
 0x53e   : > { %v915_v48 = vmul.f32 1.442695, %v914_v47 }
 0x53f   : > { %v593_v49 = vpop.permute.xlu1 %592 }
 0x540   : > { %1397 = vpow2.f32 %v915_v48  ;;  %1268 = vmatpush3.msra.mxu0 %v593_v49 }
 0x541   : > { %1277 = vmatprep.subr.mxu0 %v1568_v0 }
 0x542   : > { %v1394_v50 = vpop.eup %1393 }
 0x543   : > { %v587_v51 = vsel %vm341_vm2, %v1394_v50, 0.0 }
 0x544   : > { %588 = vadd.xlane.f32.xlu1 %v587_v51 }
 0x546   : > { %v1396_v52 = vpop.eup %1395 }
 0x547   : > { %v752_v53 = vsel %vm341_vm2, %v1396_v52, 0.0 }
 0x548   : > { %753 = vadd.xlane.f32.xlu1 %v752_v53 }
 0x54a   : > { %v1398_v54 = vpop.eup %1397 }
 0x54b   : > { %v917_v55 = vsel %vm341_vm2, %v1398_v54, 0.0 }
 0x54c   : > { %918 = vadd.xlane.f32.xlu0 %v917_v55 }
 0x559   : > { %922 = vrot.lane.b32.xlu1 %v1810_v6, %s1579_s9  ;;  %s1584_s9 = smov [#allocation8]  }
 0x562   : > { %757 = vrot.lane.b32.xlu0 %v1810_v6, %s1580_s13  ;;  %s1495_s13 = sshll.u32 %s1584_s9, 4  ;;  %s1496_s13 = int_to_ptr.vmem [resolvable:$false] %s1495_s13 }
 0x563   : > { %p1498_p7 = scmp.lt.s32.totalorder %s1881_s7, %s1496_s13 }
 0x5d1   : > { %v589_v56 = vpop.xlane.xlu1 %588 }
 0x5d2   : > { %1399 = vrcp.f32 %v589_v56 }
 0x5d5   : > { %v754_v57 = vpop.xlane.xlu1 %753 }
 0x5d6   : > { %1401 = vrcp.f32 %v754_v57 }
 0x5d9   : > { %v919_v58 = vpop.xlane.xlu0 %918  ;;  %v923_v1 = vpop.permute.xlu1 %922 }
 0x5da   : > { %1403 = vrcp.f32 %v919_v58 }
 0x5dc   : > { %v1400_v59 = vpop.eup %1399 }
 0x5dd   : > { %v591_v60 = vmul.f32 %v1400_v59, %v1394_v50  ;;  %v758_v61 = vpop.permute.xlu0 %757 }
 0x5df   : > { %1270 = vmatmul.mubr.msk.f32.vlgmr.msra.gmra.mrb[6].mxu0 %vm341_vm2, %v591_v60 }
 0x5e0   : > { %v1402_v62 = vpop.eup %1401  ;;  %1278 = vmatpush3.msra.mxu0 %v758_v61  ;;  %1279 = vmatprep.mubr.msk.f32.mxu0 %vm1569_vm0, %v1568_v0 }
 0x5e1   : > { %v756_v63 = vmul.f32 %v1402_v62, %v1396_v52  ;;  %1287 = vmatprep.subr.mxu0 %v1568_v0 }
 0x5e3   : > { %1280 = vmatmul.mubr.msk.f32.vlgmr.msra.gmra.mrb[8].mxu0 %vm341_vm2, %v756_v63 }
 0x5e4   : > { %v1404_v2 = vpop.eup %1403  ;;  %1288 = vmatpush3.msra.mxu0 %v923_v1  ;;  %1289 = vmatprep.mubr.msk.f32.mxu0 %vm1569_vm0, %v1568_v0 }
 0x5e5   : > { %v921_v3 = vmul.f32 %v1404_v2, %v1398_v54 }
 0x5e7   : > { %1290 = vmatmul.mubr.msk.f32.vlgmr.msra.gmra.mrb[10].mxu0 %vm341_vm2, %v921_v3 }
 0x6b2   : > { %v664_v6 = vpop.f32.mrb[6].mxu0 }
 0x6b3   : > { %999 = vrot.lane.b32.xlu1 %v664_v6, %s1581_s29  ;;  %v1271_v7 = vpop.f32.mrb[7].mxu0  ;;  %s1497_s29 = scalar_lea.vmem %s1496_s13, 256 }
 0x6b4   : > { %p1499_p9 = scmp.lt.s32.totalorder %s1497_s29, %s1491_s16 }
 0x6b6   : > { %v829_v8 = vpop.f32.mrb[8].mxu0  ;;  %p1500_p12 = por %p1499_p9, %p1498_p7 }
 0x6b7   : > { %1003 = vrot.lane.b32.xlu0 %v829_v8, %s1582_s17  ;;  %v1281_v9 = vpop.f32.mrb[9].mxu0 }
 0x6b8   : > { %p1501_p2 = pnand %p1500_p12, %p1494_p3 }
 0x6ba   : > { %v994_v10 = vpop.f32.mrb[10].mxu0 }
 0x6bb   : > { %1007 = vrot.lane.b32.xlu1 %v994_v10, %s1583_s24  ;;  %v1291_v11 = vpop.f32.mrb[11].mxu0 }
 0x725   : > { %v1000_v12 = vpop.permute.xlu1 %999 }
 0x726   : > { %v1010_v0 = vsel %vm341_vm2, %v1847_v29, %v1000_v12 }
 0x729   : > { %v1004_v13 = vpop.permute.xlu0 %1003 }
 0x72a   : > { %v1012_v14 = vsel %vm1011_vm3, %v1010_v0, %v1004_v13 }
 0x72d   : > { %v1008_v15 = vpop.permute.xlu1 %1007 }
 0x72e   : > { %v1014_v16 = vsel %vm1013_vm4, %v1012_v14, %v1008_v15 }
 0x72f   : > { %v1015_v17 = vpack.c.bf16 %v1014_v16, %v1014_v16 }
 0x731   : > { %1297 = vmatmul.mubr.msk.bf16.vlgmr.msra.gmra.mrb[8].mxu1 %vm294_vm1, %v1015_v17 }
 0x804   : > { %v1076_v19 = vpop.f32.mrb[8].mxu1 }
 0x805   : > { %v1077_v20 = vadd.f32 %v1214_v18, %v1076_v19  ;;  %v1298_v21 = vpop.f32.mrb[9].mxu1 }
 0x806   : > { %v1079_v22 = vpop.f32.mrb[10].mxu1 }
 0x807   : > { %v1299_v23 = vpop.f32.mrb[11].mxu1  ;;  %1082 = vst.msk [vmem:[%s268_s28] sm:$0xff] %vm294_vm1, %v1077_v20 }
 0x808   : > { %1504 = shalt.err (!%p1501_p2)
}
 0x809   : > { %s1505_s12 = scalar_lea.hbm %s1879_s15, 128  ;;  %s1509_s26 = scalar_lea.hbm %s1929_s5, 256 }
 0x80a   : > { %p1506_p13 = scmp.ne.s32.totalorder %s1879_s15, %s1505_s12  ;;  %p1510_p4 = scmp.lt.u32.totalorder %s1879_s15, %s1929_s5 }
 0x80b   : > { %p1511_p5 = scmp.lt.u32.totalorder %s1509_s26, %s1505_s12  ;;  %p1513_p8 = scmp.lt.u32.totalorder %s1505_s12, %s1879_s15 }
 0x80c   : > { %p1507_p6 = pnand %p1506_p13, %p1943_p0 }
 0x80d   : > { %p1512_p11 = por %p1511_p5, %p1510_p4 }
 0x80e   : > { %p1508_p10 = pneg %p1507_p6 }
 0x80f   : > { %p1514_p1 = por %p1513_p8, %p1512_p11 }
 0x811   : > { %p1515_p3 = pnand %p1514_p1, %p1508_p10 }
 0x813   : > { %1518 = shalt.err (!%p1515_p3)
}
 0x814   : > { %1310 = dma.vmem_to_hbm [thread:$0]  (%p1943_p0), %s1881_s7, 128, %s1879_s15, %s1084_s22  }
 0x815 PF: > { %s1109_s11 = sand.u32 1, %s1549_s18   ;;  %p1944_p7 = scmp.ne.s32.totalorder %s1934_s25, 0 }
 0x816   : > { %p1945_p9 = scmp.ge.s32.totalorder %s1561_s21, 2  ;;  %s1110_s28 = scalar_lea.sflag [#allocation4], %s1109_s11 }
 0x818   : > { %p1324_p12 = pnand %p1945_p9, %p1944_p7 }
 0x81a   : > { %1544 = dma.done.wait (!%p1324_p12), %s1110_s28, 128  }
 0x81b   : > { %1546 = vsyncadd (!%p1324_p12), %s1110_s28, 4294967168  ;;  %p19_p2 = scmp.ge.s32.totalorder %s1725_s14, 4   ;;  %s1946_s18 = smov %s1553_s19 }
 0x81c   : > { %s1947_s19 = smov %s1557_s20  ;;  %s1948_s20 = smov %s1741_s27 }
 0x81d   : > { %s1949_s21 = smov %s1725_s14  ;;  %21 = sbr.rel (!%p19_p2) target bundleno = 6 (0x6), region = 93 }
 0x824   :  { %1115 = vsyncpa [#allocation3], 1 }
 0x825   :  { %1117 = vsyncpa [#allocation3 + $0x1], 1 }
 0x826   :  { %1118 = vsyncpa [#allocation6], 1 }
 0x827   :  { %1119 = vsyncpa [#allocation4], 1 }
 0x828   :  { %1121 = vsyncpa [#allocation4 + $0x1], 1 }

</bundles_post_ra>
